<compile_context>
chip_gen: v7x
topology: tpu7x:2x2x1
jax: 0.10.0
libtpu: 0.0.40
codegen_flags: <defaults>
</compile_context>

<pallas_src>
import jax
import jax.numpy as jnp
from jax.experimental import pallas as pl
from jax.experimental.pallas import tpu as pltpu

IN_FEATURES = 4
HIDDEN = 128
LANE = 128            # batch (lane) tiling granularity
TB_MAX = 2048         # batch lanes per grid step (sweep 2048-8192 if desired)
TB_MIN = 256
MIN_GRID_STEPS = 2    # v7x megacore: give each TensorCore at least one step


def qnet_kernel(x_ref, w1_ref, b1_ref, w2_ref, b2_ref, w3_ref, b3_ref, o_ref):
    # Feature-major: x_ref (4, tb), o_ref (A, tb); batch along lanes.
    x = x_ref[...].astype(jnp.bfloat16)                              # (4, tb)

    # Layer 1 on the MXU: (128, 4) @ (4, tb); K=4 is zero-padded by Mosaic.
    h1 = jnp.dot(w1_ref[...], x, preferred_element_type=jnp.float32)  # (128, tb)
    h1 = jnp.maximum(h1 + b1_ref[...], 0.0)          # f32 bias + ReLU (v5e-safe)

    # Layer 2: (128, 128) @ (128, tb), bf16 operands, f32 accumulate.
    h2 = jnp.dot(w2_ref[...], h1.astype(jnp.bfloat16),
                 preferred_element_type=jnp.float32)
    h2 = jnp.maximum(h2 + b2_ref[...], 0.0)

    # Layer 3: (A, 128) @ (128, tb) -> narrow, lane-dense output block (A, tb).
    out = jnp.dot(w3_ref[...], h2.astype(jnp.bfloat16),
                  preferred_element_type=jnp.float32)
    o_ref[...] = (out + b3_ref[...]).astype(o_ref.dtype)


def _round_up(n, m):
    return ((n + m - 1) // m) * m


def _choose_tb(b):
    """Batch tile (lane dim): multiple of 128, >= TB_MIN, <= TB_MAX, and small
    enough that mid/large batches yield >= MIN_GRID_STEPS grid steps."""
    b_ceil = _round_up(max(b, 1), LANE)
    tb = _round_up(pl.cdiv(b_ceil, MIN_GRID_STEPS), LANE)
    tb = max(TB_MIN, tb)
    return min(tb, TB_MAX, b_ceil)


@jax.jit
def qnet_forward(x, params):
    """x: (B, 4) float32.  params: PyTorch nn.Linear layout —
    w_i: (out_features, in_features) f32, b_i: (out_features, 1) f32.
    Returns (B, action_size) float32."""
    B = x.shape[0]
    A = params["w3"].shape[0]

    # bf16 at the MXU boundary (native on v6e/v7x, also fine on v5e's MXU).
    # In a real acting/training loop, hoist these casts and do them once.
    w1 = params["w1"].astype(jnp.bfloat16)            # (128, 4)
    w2 = params["w2"].astype(jnp.bfloat16)            # (128, 128)
    w3 = params["w3"].astype(jnp.bfloat16)            # (A, 128)
    b1, b2, b3 = params["b1"], params["b2"], params["b3"]   # f32 (out, 1)

    tb = _choose_tb(B)
    b_pad = _round_up(B, tb)

    # Feature-major input (4, b_pad): batch along lanes -> contiguous DMA.
    x_t = x.T
    if b_pad != B:
        x_t = jnp.pad(x_t, ((0, 0), (0, b_pad - B)))

    grid = (b_pad // tb,)

    # Constant block index -> weights/biases stay VMEM-resident across steps.
    const = lambda arr: pl.BlockSpec(arr.shape, lambda i: (0,) * arr.ndim)

    flops = 2 * b_pad * (IN_FEATURES * HIDDEN + HIDDEN * HIDDEN + HIDDEN * A)
    bytes_accessed = (x_t.size * 4 + A * b_pad * 4
                      + (w1.size + w2.size + w3.size) * 2
                      + (b1.size + b2.size + b3.size) * 4)

    out = pl.pallas_call(
        qnet_kernel,
        out_shape=jax.ShapeDtypeStruct((A, b_pad), jnp.float32),
        grid=grid,
        in_specs=[
            pl.BlockSpec((IN_FEATURES, tb), lambda i: (0, i)),
            const(w1), const(b1), const(w2), const(b2), const(w3), const(b3),
        ],
        out_specs=pl.BlockSpec((A, tb), lambda i: (0, i)),
        compiler_params=pltpu.CompilerParams(
            # batch axis is embarrassingly parallel -> megacore sharding on v7x
            dimension_semantics=("parallel",),
        ),
        cost_estimate=pl.CostEstimate(
            flops=flops, transcendentals=0, bytes_accessed=bytes_accessed),
    )(x_t, w1, b1, w2, b2, w3, b3)

    return out[:, :B].T


def init_params(key, action_size):
    """Deterministic init mimicking nn.Linear's U(-1/sqrt(fan_in), 1/sqrt(fan_in)).
    Weights stored in PyTorch layout (out_features, in_features); biases (out, 1)."""
    ks = jax.random.split(key, 6)

    def linear(kw, kb, fan_in, fan_out):
        bound = 1.0 / jnp.sqrt(jnp.float32(fan_in))
        w = jax.random.uniform(kw, (fan_out, fan_in), jnp.float32, -bound, bound)
        b = jax.random.uniform(kb, (fan_out, 1), jnp.float32, -bound, bound)
        return w, b

    w1, b1 = linear(ks[0], ks[1], IN_FEATURES, HIDDEN)
    w2, b2 = linear(ks[2], ks[3], HIDDEN, HIDDEN)
    w3, b3 = linear(ks[4], ks[5], HIDDEN, action_size)
    return {"w1": w1, "b1": b1, "w2": w2, "b2": b2, "w3": w3, "b3": b3}


def qnet_reference(x, params):
    h1 = jnp.maximum(x @ params["w1"].T + params["b1"].T, 0.0)
    h2 = jnp.maximum(h1 @ params["w2"].T + params["b2"].T, 0.0)
    return h2 @ params["w3"].T + params["b3"].T


if __name__ == "__main__":
    key = jax.random.PRNGKey(0)
    k_params, k_x1, k_x2 = jax.random.split(key, 3)

    action_size = 2          # e.g. CartPole
    params = init_params(k_params, action_size)

    # Tolerances reflect bf16-at-the-MXU-boundary mixed precision vs f32 ref.
    ATOL = RTOL = 2e-2

    # Small RL-style batch (launch-bound at B=2; kernel is designed to scale).
    x_small = jax.random.normal(k_x1, (2, IN_FEATURES), jnp.float32)
    out_small = jax.block_until_ready(qnet_forward(x_small, params))
    ref_small = qnet_reference(x_small, params)
    assert out_small.shape == (2, action_size)
    assert jnp.allclose(out_small, ref_small, atol=ATOL, rtol=RTOL), "mismatch (B=2)"

    # A batch that is not a multiple of 128 or the tile, to exercise padding
    # and produce a multi-step grid (2 steps -> both v7x TensorCores work).
    x_big = jax.random.normal(k_x2, (300, IN_FEATURES), jnp.float32)
    out_big = jax.block_until_ready(qnet_forward(x_big, params))
    ref_big = qnet_reference(x_big, params)
    assert out_big.shape == (300, action_size)
    assert jnp.allclose(out_big, ref_big, atol=ATOL, rtol=RTOL), "mismatch (B=300)"

    print("KERNEL_OK")
</pallas_src>

<mosaic_0001>
module attributes {stable_mosaic.version = 11 : i64} {
  func.func @qnet_kernel(%arg0: i32, %arg1: memref<4x128xf32, #tpu.memory_space<vmem>>, %arg2: memref<128x4xbf16, #tpu.memory_space<vmem>>, %arg3: memref<128x1xf32, #tpu.memory_space<vmem>>, %arg4: memref<128x128xbf16, #tpu.memory_space<vmem>>, %arg5: memref<128x1xf32, #tpu.memory_space<vmem>>, %arg6: memref<2x128xbf16, #tpu.memory_space<vmem>>, %arg7: memref<2x1xf32, #tpu.memory_space<vmem>>, %arg8: memref<2x128xf32, #tpu.memory_space<vmem>>) attributes {dimension_semantics = [#tpu.dimension_semantics<parallel>], iteration_bounds = array<i64: 1>, scalar_prefetch = 0 : i64, scratch_operands = 0 : i64, tpu.core_type = #tpu.core_type<tc>, window_params = [{transform_indices = @transform_0, window_bounds = array<i64: 4, 128>}, {pipeline_mode = #tpu.pipeline_mode<synchronous>, transform_indices = @transform_1, window_bounds = array<i64: 128, 4>}, {pipeline_mode = #tpu.pipeline_mode<synchronous>, transform_indices = @transform_2, window_bounds = array<i64: 128, 1>}, {pipeline_mode = #tpu.pipeline_mode<synchronous>, transform_indices = @transform_3, window_bounds = array<i64: 128, 128>}, {pipeline_mode = #tpu.pipeline_mode<synchronous>, transform_indices = @transform_4, window_bounds = array<i64: 128, 1>}, {pipeline_mode = #tpu.pipeline_mode<synchronous>, transform_indices = @transform_5, window_bounds = array<i64: 2, 128>}, {pipeline_mode = #tpu.pipeline_mode<synchronous>, transform_indices = @transform_6, window_bounds = array<i64: 2, 1>}, {transform_indices = @transform_7, window_bounds = array<i64: 2, 128>}]} {
    %c0 = arith.constant 0 : index
    %c0_0 = arith.constant 0 : index
    %0 = vector.load %arg1[%c0, %c0_0] : memref<4x128xf32, #tpu.memory_space<vmem>>, vector<4x128xf32>
    %1 = arith.truncf %0 : vector<4x128xf32> to vector<4x128xbf16>
    %c0_1 = arith.constant 0 : index
    %c0_2 = arith.constant 0 : index
    %2 = vector.load %arg2[%c0_1, %c0_2] : memref<128x4xbf16, #tpu.memory_space<vmem>>, vector<128x4xbf16>
    %cst = arith.constant dense<0.000000e+00> : vector<128x128xf32>
    %3 = tpu.matmul %2, %1, %cst {dimension_numbers = #tpu.dot_dimension_numbers<[1], [0], [0], [1], [0, 0, 1, 1], [], []>} : vector<128x4xbf16>, vector<4x128xbf16>, vector<128x128xf32> -> vector<128x128xf32>
    %c0_3 = arith.constant 0 : index
    %c0_4 = arith.constant 0 : index
    %4 = vector.load %arg3[%c0_3, %c0_4] : memref<128x1xf32, #tpu.memory_space<vmem>>, vector<128x1xf32>
    %5 = vector.broadcast %4 : vector<128x1xf32> to vector<128x128xf32>
    %6 = arith.addf %3, %5 : vector<128x128xf32>
    %cst_5 = arith.constant 0.000000e+00 : f32
    %7 = vector.broadcast %cst_5 : f32 to vector<128x128xf32>
    %8 = arith.maximumf %6, %7 : vector<128x128xf32>
    %c0_6 = arith.constant 0 : index
    %c0_7 = arith.constant 0 : index
    %9 = vector.load %arg4[%c0_6, %c0_7] : memref<128x128xbf16, #tpu.memory_space<vmem>>, vector<128x128xbf16>
    %10 = arith.truncf %8 : vector<128x128xf32> to vector<128x128xbf16>
    %cst_8 = arith.constant dense<0.000000e+00> : vector<128x128xf32>
    %11 = tpu.matmul %9, %10, %cst_8 {dimension_numbers = #tpu.dot_dimension_numbers<[1], [0], [0], [1], [0, 0, 1, 1], [], []>} : vector<128x128xbf16>, vector<128x128xbf16>, vector<128x128xf32> -> vector<128x128xf32>
    %c0_9 = arith.constant 0 : index
    %c0_10 = arith.constant 0 : index
    %12 = vector.load %arg5[%c0_9, %c0_10] : memref<128x1xf32, #tpu.memory_space<vmem>>, vector<128x1xf32>
    %13 = vector.broadcast %12 : vector<128x1xf32> to vector<128x128xf32>
    %14 = arith.addf %11, %13 : vector<128x128xf32>
    %cst_11 = arith.constant 0.000000e+00 : f32
    %15 = vector.broadcast %cst_11 : f32 to vector<128x128xf32>
    %16 = arith.maximumf %14, %15 : vector<128x128xf32>
    %c0_12 = arith.constant 0 : index
    %c0_13 = arith.constant 0 : index
    %17 = vector.load %arg6[%c0_12, %c0_13] : memref<2x128xbf16, #tpu.memory_space<vmem>>, vector<2x128xbf16>
    %18 = arith.truncf %16 : vector<128x128xf32> to vector<128x128xbf16>
    %cst_14 = arith.constant dense<0.000000e+00> : vector<2x128xf32>
    %19 = tpu.matmul %17, %18, %cst_14 {dimension_numbers = #tpu.dot_dimension_numbers<[1], [0], [0], [1], [0, 0, 1, 1], [], []>} : vector<2x128xbf16>, vector<128x128xbf16>, vector<2x128xf32> -> vector<2x128xf32>
    %c0_15 = arith.constant 0 : index
    %c0_16 = arith.constant 0 : index
    %20 = vector.load %arg7[%c0_15, %c0_16] : memref<2x1xf32, #tpu.memory_space<vmem>>, vector<2x1xf32>
    %21 = vector.broadcast %20 : vector<2x1xf32> to vector<2x128xf32>
    %22 = arith.addf %19, %21 : vector<2x128xf32>
    %c0_17 = arith.constant 0 : index
    %c0_18 = arith.constant 0 : index
    %23 = vector.load %arg8[%c0_17, %c0_18] : memref<2x128xf32, #tpu.memory_space<vmem>>, vector<2x128xf32>
    tpu.vector_store %arg8[%c0_17, %c0_18], %22 {strides = array<i32>} : memref<2x128xf32, #tpu.memory_space<vmem>>, vector<2x128xf32>,
    return
  }
  func.func @transform_0(%arg0: i32) -> (i32, i32) {
    %c0_i32 = arith.constant 0 : i32
    %c0_i32_0 = arith.constant 0 : i32
    return %c0_i32, %arg0 : i32, i32
  }
  func.func @transform_1(%arg0: i32) -> (i32, i32) {
    %c0_i32 = arith.constant 0 : i32
    %c0_i32_0 = arith.constant 0 : i32
    %c0_i32_1 = arith.constant 0 : i32
    return %c0_i32, %c0_i32_0 : i32, i32
  }
  func.func @transform_2(%arg0: i32) -> (i32, i32) {
    %c0_i32 = arith.constant 0 : i32
    %c0_i32_0 = arith.constant 0 : i32
    %c0_i32_1 = arith.constant 0 : i32
    return %c0_i32, %c0_i32_0 : i32, i32
  }
  func.func @transform_3(%arg0: i32) -> (i32, i32) {
    %c0_i32 = arith.constant 0 : i32
    %c0_i32_0 = arith.constant 0 : i32
    %c0_i32_1 = arith.constant 0 : i32
    return %c0_i32, %c0_i32_0 : i32, i32
  }
  func.func @transform_4(%arg0: i32) -> (i32, i32) {
    %c0_i32 = arith.constant 0 : i32
    %c0_i32_0 = arith.constant 0 : i32
    %c0_i32_1 = arith.constant 0 : i32
    return %c0_i32, %c0_i32_0 : i32, i32
  }
  func.func @transform_5(%arg0: i32) -> (i32, i32) {
    %c0_i32 = arith.constant 0 : i32
    %c0_i32_0 = arith.constant 0 : i32
    %c0_i32_1 = arith.constant 0 : i32
    return %c0_i32, %c0_i32_0 : i32, i32
  }
  func.func @transform_6(%arg0: i32) -> (i32, i32) {
    %c0_i32 = arith.constant 0 : i32
    %c0_i32_0 = arith.constant 0 : i32
    %c0_i32_1 = arith.constant 0 : i32
    return %c0_i32, %c0_i32_0 : i32, i32
  }
  func.func @transform_7(%arg0: i32) -> (i32, i32) {
    %c0_i32 = arith.constant 0 : i32
    %c0_i32_0 = arith.constant 0 : i32
    return %c0_i32, %arg0 : i32, i32
  }
}

</mosaic_0001>

<bundles_post_ra>
// kernel: qnet_forward.1
= control target key start
LH: loop header
LB: loop body
LE: loop exit
PB: predicated region body
PF: predicated region fallthrough
CT: control target
= control target key end

     0   :  { %vm206_vm0 = vcmask 1041408   ;;  %vm181_vm1 = vcmask 31744   ;;  %v814_v1 = vmov 0   ;;  %vm816_vm2 = vmmov 0   ;;  %s1030_s0 = inlined_call_operand.vmem [shape: f32[4,128], index: 0, kind: input, shape index: {}]   ;;  %s1031_s1 = inlined_call_operand.vmem [shape: bf16[128,4], index: 1, kind: input, shape index: {}]   ;;  %s1032_s2 = inlined_call_operand.vmem [shape: f32[128,1], index: 2, kind: input, shape index: {}]   ;;  %s1033_s4 = inlined_call_operand.vmem [shape: f32[128,1], index: 4, kind: input, shape index: {}]   ;;  %s1034_s6 = inlined_call_operand.vmem [shape: f32[2,1], index: 6, kind: input, shape index: {}]   ;;  %s1035_s3 = inlined_call_operand.vmem [shape: bf16[128,128], index: 3, kind: input, shape index: {}]   ;;  %s1036_s5 = inlined_call_operand.vmem [shape: bf16[2,128], index: 5, kind: input, shape index: {}]   ;;  %s1037_s7 = inlined_call_operand.vmem [shape: f32[2,128], index: 7, kind: output, shape index: {}]  }
   0x1   :  { %v27_v0 = vld [vmem:[%s1030_s0] sm:$0xf]  ;;  %796 = vset.pattern.permute.xlu0 %v814_v1  ;;  %797 = vset.pattern.permute.xlu1 %v814_v1  ;;  %v799_v5 = vld [vmem:[%s1031_s1 + $0x8] sm:$0xff]   ;;  %v800_v6 = vld [vmem:[%s1031_s1 + $0x10] sm:$0xff]  }
   0x2   :  { %v28_v2 = vpack.c.bf16 %v27_v0, %v27_v0  ;;  %v798_v3 = vld [vmem:[%s1031_s1] sm:$0xff]   ;;  %v46_v8 = vld [vmem:[%s1032_s2 + $0x8] sm:$0xff]  ;;  %v47_v9 = vld [vmem:[%s1032_s2 + $0x10] sm:$0xff] }
   0x3   :  { %724 = vmatprep.mubr.msk.bf16.mxu0 %vm181_vm1, %v798_v3  ;;  %v45_v7 = vld [vmem:[%s1032_s2] sm:$0xff]  ;;  %73 = vperm.xlu1 %797, %v47_v9   ;;  %v801_v10 = vld [vmem:[%s1031_s1 + $0x18] sm:$0xff]   ;;  %v50_v14 = vld [vmem:[%s1032_s2 + $0x28] sm:$0xff] }
   0x4   :  { %792 = vmatprep.subr.msk.bf16.mxu0 %vm206_vm0, %v28_v2  ;;  %v208_v4 = vsel %vm206_vm0, %v28_v2, 0  ;;  %63 = vperm.xlu0 %796, %v45_v7   ;;  %v48_v11 = vld [vmem:[%s1032_s2 + $0x18] sm:$0xff]  ;;  %v802_v12 = vld [vmem:[%s1031_s1 + $0x20] sm:$0xff]   ;;  %v51_v15 = vld [vmem:[%s1032_s2 + $0x30] sm:$0xff] }
   0x5   :  { %723 = vmatpush3.bf16.msra.mxu0 %v208_v4  ;;  %v49_v13 = vld [vmem:[%s1032_s2 + $0x20] sm:$0xff]  ;;  %v803_v16 = vld [vmem:[%s1031_s1 + $0x28] sm:$0xff]   ;;  %v52_v17 = vld [vmem:[%s1032_s2 + $0x38] sm:$0xff] }
   0x6   :  { %v804_v18 = vld [vmem:[%s1031_s1 + $0x30] sm:$0xff]   ;;  %v53_v19 = vld [vmem:[%s1032_s2 + $0x40] sm:$0xff]  ;;  %v54_v20 = vld [vmem:[%s1032_s2 + $0x48] sm:$0xff] }
   0x7   :  { %78 = vperm.xlu1 %797, %v48_v11   ;;  %v55_v21 = vld [vmem:[%s1032_s2 + $0x50] sm:$0xff]  ;;  %v805_v22 = vld [vmem:[%s1031_s1 + $0x38] sm:$0xff]   ;;  %v57_v24 = vld [vmem:[%s1032_s2 + $0x60] sm:$0xff] }
   0x8   :  { %725 = vmatmul.mubr.msk.bf16.vlgmr.msra.gmra.mrb[0].mxu0 %vm181_vm1, %v799_v5  ;;  %68 = vperm.xlu0 %796, %v46_v8   ;;  %v56_v23 = vld [vmem:[%s1032_s2 + $0x58] sm:$0xff]  ;;  %v58_v25 = vld [vmem:[%s1032_s2 + $0x68] sm:$0xff]  ;;  %v59_v26 = vld [vmem:[%s1032_s2 + $0x70] sm:$0xff] }
   0x9   :  { %728 = vmatprep.mubr.msk.bf16.mxu0 %vm181_vm1, %v800_v6  ;;  %v60_v27 = vld [vmem:[%s1032_s2 + $0x78] sm:$0xff]  ;;  %v347_v28 = vld [vmem:[%s1033_s4] sm:$0xff]  ;;  %v348_v29 = vld [vmem:[%s1033_s4 + $0x8] sm:$0xff] }
   0xa   :  { %v349_v30 = vld [vmem:[%s1033_s4 + $0x10] sm:$0xff]  ;;  %v350_v31 = vld [vmem:[%s1033_s4 + $0x18] sm:$0xff]  ;;  %v351_v32 = vld [vmem:[%s1033_s4 + $0x20] sm:$0xff] }
   0xb   :  { %88 = vperm.xlu1 %797, %v50_v14   ;;  %v352_v33 = vld [vmem:[%s1033_s4 + $0x28] sm:$0xff]  ;;  %v353_v34 = vld [vmem:[%s1033_s4 + $0x30] sm:$0xff]  ;;  %v354_v35 = vld [vmem:[%s1033_s4 + $0x38] sm:$0xff] }
   0xc   :  { %83 = vperm.xlu0 %796, %v49_v13   ;;  %v355_v36 = vld [vmem:[%s1033_s4 + $0x40] sm:$0xff]  ;;  %v356_v37 = vld [vmem:[%s1033_s4 + $0x48] sm:$0xff]  ;;  %v357_v38 = vld [vmem:[%s1033_s4 + $0x50] sm:$0xff] }
   0xd   :  { %v358_v39 = vld [vmem:[%s1033_s4 + $0x58] sm:$0xff]  ;;  %v359_v40 = vld [vmem:[%s1033_s4 + $0x60] sm:$0xff]  ;;  %v360_v41 = vld [vmem:[%s1033_s4 + $0x68] sm:$0xff] }
   0xe   :  { %v361_v42 = vld [vmem:[%s1033_s4 + $0x70] sm:$0xff]  ;;  %v362_v43 = vld [vmem:[%s1033_s4 + $0x78] sm:$0xff]  ;;  %v613_v44 = vld [vmem:[%s1034_s6] sm:$0x3] }
   0xf   :  { %98 = vperm.xlu1 %797, %v52_v17   ;;  %v806_v45 = vld [vmem:[%s1035_s3] sm:$0xff]  }
  0x10   :  { %729 = vmatmul.mubr.msk.bf16.gmra.mrb[4].mxu0 %vm181_vm1, %v801_v10  ;;  %93 = vperm.xlu0 %796, %v51_v15  }
  0x11   :  { %732 = vmatprep.mubr.msk.bf16.mxu0 %vm181_vm1, %v802_v12  ;;  %756 = vmatprep.mubr.bf16.mxu1 %v806_v45 }
  0x13   :  { %108 = vperm.xlu1 %797, %v54_v20  }
  0x14   :  { %103 = vperm.xlu0 %796, %v53_v19  }
  0x17   :  { %118 = vperm.xlu1 %797, %v56_v23  }
  0x18   :  { %733 = vmatmul.mubr.msk.bf16.gmra.mrb[8].mxu0 %vm181_vm1, %v803_v16  ;;  %113 = vperm.xlu0 %796, %v55_v21  }
  0x19   :  { %736 = vmatprep.mubr.msk.bf16.mxu0 %vm181_vm1, %v804_v18 }
  0x1b   :  { %128 = vperm.xlu1 %797, %v58_v25  }
  0x1c   :  { %123 = vperm.xlu0 %796, %v57_v24  }
  0x1f   :  { %138 = vperm.xlu1 %797, %v60_v27  }
  0x20   :  { %737 = vmatmul.mubr.msk.bf16.gmra.mrb[12].mxu0 %vm181_vm1, %v805_v22  ;;  %133 = vperm.xlu0 %796, %v59_v26  }
  0x23   :  { %370 = vperm.xlu1 %797, %v348_v29  }
  0x24   :  { %365 = vperm.xlu0 %796, %v347_v28  }
  0x27   :  { %380 = vperm.xlu1 %797, %v350_v31  }
  0x28   :  { %375 = vperm.xlu0 %796, %v349_v30  }
  0x2b   :  { %390 = vperm.xlu1 %797, %v352_v33  }
  0x2c   :  { %385 = vperm.xlu0 %796, %v351_v32  }
  0x2f   :  { %400 = vperm.xlu1 %797, %v354_v35  }
  0x30   :  { %395 = vperm.xlu0 %796, %v353_v34  }
  0x33   :  { %410 = vperm.xlu1 %797, %v356_v37  }
  0x34   :  { %405 = vperm.xlu0 %796, %v355_v36  }
  0x37   :  { %420 = vperm.xlu1 %797, %v358_v39  }
  0x38   :  { %415 = vperm.xlu0 %796, %v357_v38  }
  0x3b   :  { %430 = vperm.xlu1 %797, %v360_v41  }
  0x3c   :  { %425 = vperm.xlu0 %796, %v359_v40  }
  0x3f   :  { %440 = vperm.xlu1 %797, %v362_v43  }
  0x40   :  { %435 = vperm.xlu0 %796, %v361_v42  }
  0x44   :  { %616 = vperm.xlu0 %796, %v613_v44  }
  0x82   :  { %v74_v47 = vpop.permute.xlu1 %73 }
  0x83   :  { %v64_v46 = vpop.permute.xlu0 %63 }
  0x86   :  { %v79_v49 = vpop.permute.xlu1 %78 }
  0x87   :  { %v69_v48 = vpop.permute.xlu0 %68 }
  0x8a   :  { %v89_v51 = vpop.permute.xlu1 %88 }
  0x8b   :  { %v84_v50 = vpop.permute.xlu0 %83 }
  0x8e   :  { %v99_v56 = vpop.permute.xlu1 %98 }
  0x8f   :  { %v94_v52 = vpop.permute.xlu0 %93 }
  0x92   :  { %v109_v4 = vpop.permute.xlu1 %108 }
  0x93   :  { %v104_v0 = vpop.permute.xlu0 %103 }
  0x96   :  { %v119_v17 = vpop.permute.xlu1 %118 }
  0x97   :  { %v114_v13 = vpop.permute.xlu0 %113 }
  0x9a   :  { %v129_v30 = vpop.permute.xlu1 %128 }
  0x9b   :  { %v124_v25 = vpop.permute.xlu0 %123 }
  0x9e   :  { %v139_v42 = vpop.permute.xlu1 %138 }
  0x9f   :  { %v134_v37 = vpop.permute.xlu0 %133 }
  0xdb   :  { %v726_v53 = vpop.f32.mrb[0].mxu0 }
  0xdc   :  { %v253_v54 = vadd.f32 %v726_v53, %v74_v47  ;;  %v244_v55 = vpop.f32.mrb[1].mxu0 }
  0xdd   :  { %v245_v57 = vadd.f32 %v244_v55, %v64_v46  ;;  %v727_v58 = vpop.f32.mrb[2].mxu0  ;;  %v808_v55 = vld [vmem:[%s1035_s3 + $0x10] sm:$0xff]  }
  0xde   :  { %v256_v59 = vadd.f32 %v727_v58, %v79_v49  ;;  %v247_v60 = vpop.f32.mrb[3].mxu0  ;;  %v309_v62 = vmax.f32 %v253_v54, 0.0  ;;  %v807_v54 = vld [vmem:[%s1035_s3 + $0x8] sm:$0xff]  }
  0xdf   :  { %v248_v61 = vadd.f32 %v247_v60, %v69_v48  ;;  %v307_v1 = vmax.f32 %v245_v57, 0.0  ;;  %v810_v57 = vld [vmem:[%s1035_s3 + $0x20] sm:$0xff]   ;;  %v811_v58 = vld [vmem:[%s1035_s3 + $0x28] sm:$0xff]   ;;  %v813_v60 = vld [vmem:[%s1035_s3 + $0x38] sm:$0xff]  }
  0xe0   :  { %v310_v63 = vmax.f32 %v256_v59, 0.0  ;;  %v812_v59 = vld [vmem:[%s1035_s3 + $0x30] sm:$0xff]  }
  0xe1   :  { %v308_v2 = vmax.f32 %v248_v61, 0.0  ;;  %v815_v61 = vmov 0.0  }
  0xe2   :  { %v340_v3 = vpack.c.bf16 %v310_v63, %v309_v62  ;;  %772 = vmatprep.subr.bf16.mxu0 %v815_v61  ;;  %788 = vmatprep.mubr.msk.bf16.mxu0 %vm816_vm2, %v815_v61  ;;  %v366_v62 = vpop.permute.xlu0 %365  ;;  %v371_v63 = vpop.permute.xlu1 %370 }
  0xe3   :  { %v730_v5 = vpop.f32.mrb[4].mxu0  ;;  %v339_v6 = vpack.c.bf16 %v308_v2, %v307_v1 }
  0xe4   :  { %v269_v7 = vadd.f32 %v730_v5, %v94_v52  ;;  %v260_v8 = vpop.f32.mrb[5].mxu0 }
  0xe5   :  { %v261_v9 = vadd.f32 %v260_v8, %v84_v50  ;;  %v731_v10 = vpop.f32.mrb[6].mxu0  ;;  %740 = vmatprep.subr.bf16.mxu1 %v339_v6 }
  0xe6   :  { %v272_v11 = vadd.f32 %v731_v10, %v99_v56  ;;  %v263_v12 = vpop.f32.mrb[7].mxu0  ;;  %741 = vmatpush3.bf16.msra.mxu1 %v339_v6  ;;  %v313_v15 = vmax.f32 %v269_v7, 0.0  ;;  %v809_v56 = vld [vmem:[%s1035_s3 + $0x18] sm:$0xff]   ;;  %v381_v1 = vpop.permute.xlu1 %380 }
  0xe7   :  { %v264_v14 = vadd.f32 %v263_v12, %v89_v51  ;;  %742 = vmatprep.subr.bf16.mxu1 %v340_v3  ;;  %v311_v18 = vmax.f32 %v261_v9, 0.0 }
  0xe8   :  { %v314_v16 = vmax.f32 %v272_v11, 0.0 }
  0xe9   :  { %v312_v19 = vmax.f32 %v264_v14, 0.0 }
  0xea   :  { %v342_v20 = vpack.c.bf16 %v314_v16, %v313_v15  ;;  %743 = vmatpush3.bf16.msra.mxu1 %v340_v3  ;;  %v391_v3 = vpop.permute.xlu1 %390 }
  0xeb   :  { %v341_v21 = vpack.c.bf16 %v312_v19, %v311_v18  ;;  %v734_v22 = vpop.f32.mrb[8].mxu0 }
  0xec   :  { %v285_v23 = vadd.f32 %v734_v22, %v114_v13  ;;  %v276_v24 = vpop.f32.mrb[9].mxu0 }
  0xed   :  { %v277_v26 = vadd.f32 %v276_v24, %v104_v0  ;;  %v735_v27 = vpop.f32.mrb[10].mxu0  ;;  %744 = vmatprep.subr.bf16.mxu1 %v341_v21  ;;  %v376_v0 = vpop.permute.xlu0 %375 }
  0xee   :  { %v288_v28 = vadd.f32 %v735_v27, %v119_v17  ;;  %v279_v29 = vpop.f32.mrb[11].mxu0  ;;  %745 = vmatpush3.bf16.msra.mxu1 %v341_v21  ;;  %v317_v32 = vmax.f32 %v285_v23, 0.0  ;;  %v401_v8 = vpop.permute.xlu1 %400 }
  0xef   :  { %v280_v31 = vadd.f32 %v279_v29, %v109_v4  ;;  %746 = vmatprep.subr.bf16.mxu1 %v342_v20  ;;  %v315_v34 = vmax.f32 %v277_v26, 0.0 }
  0xf0   :  { %v318_v33 = vmax.f32 %v288_v28, 0.0 }
  0xf1   :  { %v316_v35 = vmax.f32 %v280_v31, 0.0  ;;  %v386_v2 = vpop.permute.xlu0 %385 }
  0xf2   :  { %v344_v36 = vpack.c.bf16 %v318_v33, %v317_v32  ;;  %747 = vmatpush3.bf16.msra.mxu1 %v342_v20  ;;  %v411_v20 = vpop.permute.xlu1 %410 }
  0xf3   :  { %v343_v38 = vpack.c.bf16 %v316_v35, %v315_v34  ;;  %v738_v39 = vpop.f32.mrb[12].mxu0 }
  0xf4   :  { %v301_v40 = vadd.f32 %v738_v39, %v134_v37  ;;  %v292_v41 = vpop.f32.mrb[13].mxu0 }
  0xf5   :  { %v293_v43 = vadd.f32 %v292_v41, %v124_v25  ;;  %v739_v44 = vpop.f32.mrb[14].mxu0  ;;  %748 = vmatprep.subr.bf16.mxu1 %v343_v38  ;;  %v396_v4 = vpop.permute.xlu0 %395 }
  0xf6   :  { %v304_v45 = vadd.f32 %v739_v44, %v139_v42  ;;  %v295_v46 = vpop.f32.mrb[15].mxu0  ;;  %749 = vmatpush3.bf16.msra.mxu1 %v343_v38  ;;  %v321_v48 = vmax.f32 %v301_v40, 0.0  ;;  %v421_v33 = vpop.permute.xlu1 %420 }
  0xf7   :  { %v296_v47 = vadd.f32 %v295_v46, %v129_v30  ;;  %750 = vmatprep.subr.bf16.mxu1 %v344_v36  ;;  %v319_v50 = vmax.f32 %v293_v43, 0.0 }
  0xf8   :  { %v322_v49 = vmax.f32 %v304_v45, 0.0 }
  0xf9   :  { %v320_v51 = vmax.f32 %v296_v47, 0.0  ;;  %v406_v16 = vpop.permute.xlu0 %405 }
  0xfa   :  { %v346_v52 = vpack.c.bf16 %v322_v49, %v321_v48  ;;  %751 = vmatpush3.bf16.msra.mxu1 %v344_v36  ;;  %v431_v46 = vpop.permute.xlu1 %430 }
  0xfb   :  { %v345_v53 = vpack.c.bf16 %v320_v51, %v319_v50 }
  0xfd   :  { %752 = vmatprep.subr.bf16.mxu1 %v345_v53  ;;  %v416_v29 = vpop.permute.xlu0 %415 }
  0xfe   :  { %753 = vmatpush3.bf16.msra.mxu1 %v345_v53 }
  0xff   :  { %754 = vmatprep.subr.bf16.mxu1 %v346_v52 }
 0x101   :  { %v426_v41 = vpop.permute.xlu0 %425 }
 0x102   :  { %755 = vmatpush3.bf16.msra.mxu1 %v346_v52 }
 0x105   :  { %757 = vmatmul.mubr.bf16.vlgmr.msra.gmra.mrb[0].mxu1 %v807_v54  ;;  %v436_v53 = vpop.permute.xlu0 %435 }
 0x106   :  { %760 = vmatprep.mubr.bf16.mxu1 %v808_v55 }
 0x10d   :  { %761 = vmatmul.mubr.bf16.gmra.mrb[4].mxu1 %v809_v56 }
 0x10e   :  { %764 = vmatprep.mubr.bf16.mxu1 %v810_v57 }
 0x115   :  { %765 = vmatmul.mubr.bf16.gmra.mrb[8].mxu1 %v811_v58  ;;  %v441_v58 = vpop.permute.xlu1 %440 }
 0x116   :  { %768 = vmatprep.mubr.bf16.mxu1 %v812_v59 }
 0x11d   :  { %769 = vmatmul.mubr.bf16.gmra.mrb[12].mxu1 %v813_v60 }
 0x1d8   :  { %v758_v5 = vpop.f32.mrb[0].mxu1 }
 0x1d9   :  { %v534_v6 = vadd.f32 %v758_v5, %v376_v0  ;;  %v525_v7 = vpop.f32.mrb[1].mxu1 }
 0x1da   :  { %v526_v9 = vadd.f32 %v525_v7, %v366_v62  ;;  %v759_v10 = vpop.f32.mrb[2].mxu1  ;;  %v604_v7 = vld [vmem:[%s1036_s5] sm:$0x1] }
 0x1db   :  { %v537_v11 = vadd.f32 %v759_v10, %v381_v1  ;;  %v528_v12 = vpop.f32.mrb[3].mxu1  ;;  %v590_v14 = vmax.f32 %v534_v6, 0.0 }
 0x1dc   :  { %v529_v13 = vadd.f32 %v528_v12, %v371_v63  ;;  %v588_v17 = vmax.f32 %v526_v9, 0.0 }
 0x1dd   :  { %v591_v15 = vmax.f32 %v537_v11, 0.0 }
 0x1de   :  { %v589_v18 = vmax.f32 %v529_v13, 0.0 }
 0x1df   :  { %v606_v19 = vpack.c.bf16 %v591_v15, %v590_v14 }
 0x1e0   :  { %v605_v21 = vpack.c.bf16 %v589_v18, %v588_v17  ;;  %v762_v22 = vpop.f32.mrb[4].mxu1 }
 0x1e1   :  { %v550_v23 = vadd.f32 %v762_v22, %v396_v4  ;;  %v541_v24 = vpop.f32.mrb[5].mxu1 }
 0x1e2   :  { %v542_v25 = vadd.f32 %v541_v24, %v386_v2  ;;  %v763_v26 = vpop.f32.mrb[6].mxu1  ;;  %773 = vmatpush3.bf16.msra.mxu0 %v605_v21 }
 0x1e3   :  { %v553_v27 = vadd.f32 %v763_v26, %v401_v8  ;;  %v544_v28 = vpop.f32.mrb[7].mxu1  ;;  %774 = vmatprep.subr.bf16.mxu0 %v815_v61  ;;  %v594_v31 = vmax.f32 %v550_v23, 0.0  ;;  %v617_v8 = vpop.permute.xlu0 %616 }
 0x1e4   :  { %v545_v30 = vadd.f32 %v544_v28, %v391_v3  ;;  %v592_v34 = vmax.f32 %v542_v25, 0.0 }
 0x1e5   :  { %v595_v32 = vmax.f32 %v553_v27, 0.0 }
 0x1e6   :  { %v593_v35 = vmax.f32 %v545_v30, 0.0  ;;  %775 = vmatpush3.bf16.msra.mxu0 %v606_v19 }
 0x1e7   :  { %v608_v36 = vpack.c.bf16 %v595_v32, %v594_v31  ;;  %776 = vmatprep.subr.bf16.mxu0 %v815_v61 }
 0x1e8   :  { %v607_v37 = vpack.c.bf16 %v593_v35, %v592_v34  ;;  %v766_v38 = vpop.f32.mrb[8].mxu1 }
 0x1e9   :  { %v566_v39 = vadd.f32 %v766_v38, %v416_v29  ;;  %v557_v40 = vpop.f32.mrb[9].mxu1 }
 0x1ea   :  { %v558_v42 = vadd.f32 %v557_v40, %v406_v16  ;;  %v767_v43 = vpop.f32.mrb[10].mxu1  ;;  %777 = vmatpush3.bf16.msra.mxu0 %v607_v37 }
 0x1eb   :  { %v569_v44 = vadd.f32 %v767_v43, %v421_v33  ;;  %v560_v45 = vpop.f32.mrb[11].mxu1  ;;  %778 = vmatprep.subr.bf16.mxu0 %v815_v61  ;;  %v598_v48 = vmax.f32 %v566_v39, 0.0 }
 0x1ec   :  { %v561_v47 = vadd.f32 %v560_v45, %v411_v20  ;;  %v596_v50 = vmax.f32 %v558_v42, 0.0 }
 0x1ed   :  { %v599_v49 = vmax.f32 %v569_v44, 0.0 }
 0x1ee   :  { %v597_v51 = vmax.f32 %v561_v47, 0.0  ;;  %779 = vmatpush3.bf16.msra.mxu0 %v608_v36 }
 0x1ef   :  { %v610_v52 = vpack.c.bf16 %v599_v49, %v598_v48  ;;  %780 = vmatprep.subr.bf16.mxu0 %v815_v61 }
 0x1f0   :  { %v609_v54 = vpack.c.bf16 %v597_v51, %v596_v50  ;;  %v770_v55 = vpop.f32.mrb[12].mxu1 }
 0x1f1   :  { %v582_v56 = vadd.f32 %v770_v55, %v436_v53  ;;  %v573_v57 = vpop.f32.mrb[13].mxu1 }
 0x1f2   :  { %v574_v59 = vadd.f32 %v573_v57, %v426_v41  ;;  %v771_v60 = vpop.f32.mrb[14].mxu1  ;;  %781 = vmatpush3.bf16.msra.mxu0 %v609_v54 }
 0x1f3   :  { %v585_v62 = vadd.f32 %v771_v60, %v441_v58  ;;  %v576_v63 = vpop.f32.mrb[15].mxu1  ;;  %782 = vmatprep.subr.bf16.mxu0 %v815_v61  ;;  %v602_v1 = vmax.f32 %v582_v56, 0.0 }
 0x1f4   :  { %v577_v0 = vadd.f32 %v576_v63, %v431_v46  ;;  %v600_v3 = vmax.f32 %v574_v59, 0.0 }
 0x1f5   :  { %v603_v2 = vmax.f32 %v585_v62, 0.0 }
 0x1f6   :  { %v601_v4 = vmax.f32 %v577_v0, 0.0  ;;  %783 = vmatpush3.bf16.msra.mxu0 %v610_v52 }
 0x1f7   :  { %v612_v5 = vpack.c.bf16 %v603_v2, %v602_v1  ;;  %784 = vmatprep.subr.bf16.mxu0 %v815_v61 }
 0x1f8   :  { %v611_v6 = vpack.c.bf16 %v601_v4, %v600_v3 }
 0x1fa   :  { %785 = vmatpush3.bf16.msra.mxu0 %v611_v6 }
 0x1fb   :  { %786 = vmatprep.subr.bf16.mxu0 %v815_v61 }
 0x1fe   :  { %787 = vmatpush3.bf16.msra.mxu0 %v612_v5 }
 0x201   :  { %789 = vmatmul.mubr.bf16.vlgmr.msra.gmra.mrb[16].mxu0 %v604_v7 }
 0x2d4   :  { %v653_v9 = vpop.f32.mrb[16].mxu0 }
 0x2d5   :  { %v654_v10 = vadd.f32 %v653_v9, %v617_v8  ;;  %v790_v11 = vpop.f32.mrb[17].mxu0 }
 0x2d6   :  { %v656_v12 = vpop.f32.mrb[18].mxu0 }
 0x2d7   :  { %659 = vst [vmem:[%s1037_s7] sm:$0x3] %v654_v10  ;;  %v791_v13 = vpop.f32.mrb[19].mxu0 }

</bundles_post_ra>
